<compile_context>
chip_gen: v7x
topology: tpu7x:2x2x1
jax: 0.10.0
libtpu: 0.0.40
codegen_flags: <defaults>
</compile_context>

<pallas_src>
import jax
import jax.numpy as jnp
from jax.experimental import pallas as pl
from jax.experimental.pallas import tpu as pltpu


def _block_kernel(params_ref, x_ref, o_ref):
    # params_ref: SMEM (2*C, C+1); row l*C + o = [W_l[o, :], b_l[o]].
    # x_ref/o_ref: VMEM (1, C, TP) tiles — channels on sublanes, pixels on lanes.
    x = x_ref[0].astype(jnp.float32)          # (C, TP)
    C = x.shape[0]
    x_rows = [x[c:c + 1, :] for c in range(C)]  # each (1, TP)

    def mix_relu(rows, layer):
        base = layer * C
        out = []
        for o in range(C):
            acc = params_ref[base + o, 0] * rows[0]       # scalar * (1, TP) on VPU
            for c in range(1, C):
                acc = acc + params_ref[base + o, c] * rows[c]
            out.append(jnp.maximum(acc + params_ref[base + o, C], 0.0))
        return out

    h = mix_relu(x_rows, 0)                    # relu(conv1(z))
    h = mix_relu(h, 1)                         # relu(conv2(.))
    out_rows = [h[c] + x_rows[c] for c in range(C)]        # residual add

    # Single lane-dense store of the whole (C, TP) tile.
    o_ref[0] = jnp.concatenate(out_rows, axis=0).astype(o_ref.dtype)


def _pick_spatial_tile(P, tile_p):
    """Largest lane-dense tile: whole row if it fits, else a mult-of-128 divisor."""
    if P <= tile_p:
        return P
    t = tile_p - (tile_p % 128)
    while t >= 128:
        if P % t == 0:
            return t
        t -= 128
    return P  # fall back: whole spatial extent per step


def block_forward(z, w1, b1, w2, b2, *, tile_p=8192):
    """z: (N, C, H, W) float32 NCHW.  w1/w2: (C_out, C_in).  b1/b2: (C,)."""
    N, C, H, W = z.shape
    P = H * W

    # Free view of NCHW: spatial is already the fastest-varying (lane) axis.
    x3d = z.reshape(N, C, P)

    # Pack both layers' weights + biases into one tiny SMEM-resident table:
    # row (layer*C + o) = [W_layer[o, 0..C-1], b_layer[o]].
    params = jnp.concatenate(
        [jnp.concatenate([w1, b1[:, None]], axis=1),
         jnp.concatenate([w2, b2[:, None]], axis=1)],
        axis=0,
    ).astype(jnp.float32)                      # (2*C, C+1)

    tp = _pick_spatial_tile(P, tile_p)
    grid = (N, P // tp)

    out3d = pl.pallas_call(
        _block_kernel,
        out_shape=jax.ShapeDtypeStruct((N, C, P), z.dtype),
        grid=grid,
        in_specs=[
            # Whole packed parameter table resident in SMEM (scalar reads).
            pl.BlockSpec(memory_space=pltpu.MemorySpace.SMEM),
            # Input tile: one image's channel block x spatial tile.
            pl.BlockSpec((1, C, tp), lambda n, p: (n, 0, p)),
        ],
        out_specs=pl.BlockSpec((1, C, tp), lambda n, p: (n, 0, p)),
        compiler_params=pltpu.CompilerParams(
            dimension_semantics=("parallel", "parallel"),
            # Explicit budget: tiles here are tiny; stays well inside v7x's 64 MiB.
            vmem_limit_bytes=32 * 1024 * 1024,
        ),
    )(params, x3d)

    return out3d.reshape(N, C, H, W)


def _reference(z, w1, b1, w2, b2):
    # Pure-JAX reference of the PyTorch forward (1x1 convs as einsums).
    h = jnp.einsum("nchw,oc->nohw", z, w1) + b1[None, :, None, None]
    h = jnp.maximum(h, 0.0)
    h = jnp.einsum("nchw,oc->nohw", h, w2) + b2[None, :, None, None]
    h = jnp.maximum(h, 0.0)
    return h + z


if __name__ == "__main__":
    key = jax.random.PRNGKey(0)
    k_z, k_w1, k_b1, k_w2, k_b2 = jax.random.split(key, 5)

    N, C, H, W = 2, 4, 16, 16          # features = 4
    z = jax.random.normal(k_z, (N, C, H, W), dtype=jnp.float32)

    # Parameter init mirroring nn.Conv2d(C, C, kernel_size=1) shapes.
    fan_in = C  # 1x1 kernel
    bound = 1.0 / (fan_in ** 0.5)
    w1 = jax.random.uniform(k_w1, (C, C), minval=-bound, maxval=bound, dtype=jnp.float32)
    b1 = jax.random.uniform(k_b1, (C,), minval=-bound, maxval=bound, dtype=jnp.float32)
    w2 = jax.random.uniform(k_w2, (C, C), minval=-bound, maxval=bound, dtype=jnp.float32)
    b2 = jax.random.uniform(k_b2, (C,), minval=-bound, maxval=bound, dtype=jnp.float32)

    out = jax.block_until_ready(block_forward(z, w1, b1, w2, b2))

    ref = _reference(z, w1, b1, w2, b2)
    assert out.shape == (N, C, H, W)
    assert jnp.allclose(out, ref, atol=1e-5, rtol=1e-5), "mismatch vs reference"

    print("KERNEL_OK")
</pallas_src>

<mosaic_0001>
module attributes {stable_mosaic.version = 11 : i64} {
  func.func @_block_kernel(%arg0: i32, %arg1: i32, %arg2: memref<8x5xf32, #tpu.memory_space<smem>>, %arg3: memref<1x4x256xf32, #tpu.memory_space<vmem>>, %arg4: memref<1x4x256xf32, #tpu.memory_space<vmem>>) attributes {dimension_semantics = [#tpu.dimension_semantics<parallel>, #tpu.dimension_semantics<parallel>], iteration_bounds = array<i64: 2, 1>, scalar_prefetch = 0 : i64, scratch_operands = 0 : i64, tpu.core_type = #tpu.core_type<tc>, window_params = [{transform_indices = @transform_0, window_bounds = array<i64: 8, 5>}, {transform_indices = @transform_1, window_bounds = array<i64: 1, 4, 256>}, {transform_indices = @transform_2, window_bounds = array<i64: 1, 4, 256>}]} {
    %c0 = arith.constant 0 : index
    %c0_0 = arith.constant 0 : index
    %c0_1 = arith.constant 0 : index
    %0 = vector.load %arg3[%c0, %c0_0, %c0_1] : memref<1x4x256xf32, #tpu.memory_space<vmem>>, vector<1x4x256xf32>
    %1 = vector.shape_cast %0 : vector<1x4x256xf32> to vector<4x256xf32>
    %2 = vector.extract_strided_slice %1 {offsets = [0, 0], sizes = [1, 256], strides = [1, 1]} : vector<4x256xf32> to vector<1x256xf32>
    %3 = vector.extract_strided_slice %1 {offsets = [1, 0], sizes = [1, 256], strides = [1, 1]} : vector<4x256xf32> to vector<1x256xf32>
    %4 = vector.extract_strided_slice %1 {offsets = [2, 0], sizes = [1, 256], strides = [1, 1]} : vector<4x256xf32> to vector<1x256xf32>
    %5 = vector.extract_strided_slice %1 {offsets = [3, 0], sizes = [1, 256], strides = [1, 1]} : vector<4x256xf32> to vector<1x256xf32>
    %c0_2 = arith.constant 0 : index
    %c0_3 = arith.constant 0 : index
    %6 = memref.load %arg2[%c0_2, %c0_3] : memref<8x5xf32, #tpu.memory_space<smem>>
    %7 = vector.broadcast %6 : f32 to vector<1x256xf32>
    %8 = arith.mulf %7, %2 : vector<1x256xf32>
    %c0_4 = arith.constant 0 : index
    %c1 = arith.constant 1 : index
    %9 = memref.load %arg2[%c0_4, %c1] : memref<8x5xf32, #tpu.memory_space<smem>>
    %10 = vector.broadcast %9 : f32 to vector<1x256xf32>
    %11 = arith.mulf %10, %3 : vector<1x256xf32>
    %12 = arith.addf %8, %11 : vector<1x256xf32>
    %c0_5 = arith.constant 0 : index
    %c2 = arith.constant 2 : index
    %13 = memref.load %arg2[%c0_5, %c2] : memref<8x5xf32, #tpu.memory_space<smem>>
    %14 = vector.broadcast %13 : f32 to vector<1x256xf32>
    %15 = arith.mulf %14, %4 : vector<1x256xf32>
    %16 = arith.addf %12, %15 : vector<1x256xf32>
    %c0_6 = arith.constant 0 : index
    %c3 = arith.constant 3 : index
    %17 = memref.load %arg2[%c0_6, %c3] : memref<8x5xf32, #tpu.memory_space<smem>>
    %18 = vector.broadcast %17 : f32 to vector<1x256xf32>
    %19 = arith.mulf %18, %5 : vector<1x256xf32>
    %20 = arith.addf %16, %19 : vector<1x256xf32>
    %c0_7 = arith.constant 0 : index
    %c4 = arith.constant 4 : index
    %21 = memref.load %arg2[%c0_7, %c4] : memref<8x5xf32, #tpu.memory_space<smem>>
    %22 = vector.broadcast %21 : f32 to vector<1x256xf32>
    %23 = arith.addf %20, %22 : vector<1x256xf32>
    %cst = arith.constant 0.000000e+00 : f32
    %24 = vector.broadcast %cst : f32 to vector<1x256xf32>
    %25 = arith.maximumf %23, %24 : vector<1x256xf32>
    %c1_8 = arith.constant 1 : index
    %c0_9 = arith.constant 0 : index
    %26 = memref.load %arg2[%c1_8, %c0_9] : memref<8x5xf32, #tpu.memory_space<smem>>
    %27 = vector.broadcast %26 : f32 to vector<1x256xf32>
    %28 = arith.mulf %27, %2 : vector<1x256xf32>
    %c1_10 = arith.constant 1 : index
    %c1_11 = arith.constant 1 : index
    %29 = memref.load %arg2[%c1_10, %c1_11] : memref<8x5xf32, #tpu.memory_space<smem>>
    %30 = vector.broadcast %29 : f32 to vector<1x256xf32>
    %31 = arith.mulf %30, %3 : vector<1x256xf32>
    %32 = arith.addf %28, %31 : vector<1x256xf32>
    %c1_12 = arith.constant 1 : index
    %c2_13 = arith.constant 2 : index
    %33 = memref.load %arg2[%c1_12, %c2_13] : memref<8x5xf32, #tpu.memory_space<smem>>
    %34 = vector.broadcast %33 : f32 to vector<1x256xf32>
    %35 = arith.mulf %34, %4 : vector<1x256xf32>
    %36 = arith.addf %32, %35 : vector<1x256xf32>
    %c1_14 = arith.constant 1 : index
    %c3_15 = arith.constant 3 : index
    %37 = memref.load %arg2[%c1_14, %c3_15] : memref<8x5xf32, #tpu.memory_space<smem>>
    %38 = vector.broadcast %37 : f32 to vector<1x256xf32>
    %39 = arith.mulf %38, %5 : vector<1x256xf32>
    %40 = arith.addf %36, %39 : vector<1x256xf32>
    %c1_16 = arith.constant 1 : index
    %c4_17 = arith.constant 4 : index
    %41 = memref.load %arg2[%c1_16, %c4_17] : memref<8x5xf32, #tpu.memory_space<smem>>
    %42 = vector.broadcast %41 : f32 to vector<1x256xf32>
    %43 = arith.addf %40, %42 : vector<1x256xf32>
    %cst_18 = arith.constant 0.000000e+00 : f32
    %44 = vector.broadcast %cst_18 : f32 to vector<1x256xf32>
    %45 = arith.maximumf %43, %44 : vector<1x256xf32>
    %c2_19 = arith.constant 2 : index
    %c0_20 = arith.constant 0 : index
    %46 = memref.load %arg2[%c2_19, %c0_20] : memref<8x5xf32, #tpu.memory_space<smem>>
    %47 = vector.broadcast %46 : f32 to vector<1x256xf32>
    %48 = arith.mulf %47, %2 : vector<1x256xf32>
    %c2_21 = arith.constant 2 : index
    %c1_22 = arith.constant 1 : index
    %49 = memref.load %arg2[%c2_21, %c1_22] : memref<8x5xf32, #tpu.memory_space<smem>>
    %50 = vector.broadcast %49 : f32 to vector<1x256xf32>
    %51 = arith.mulf %50, %3 : vector<1x256xf32>
    %52 = arith.addf %48, %51 : vector<1x256xf32>
    %c2_23 = arith.constant 2 : index
    %c2_24 = arith.constant 2 : index
    %53 = memref.load %arg2[%c2_23, %c2_24] : memref<8x5xf32, #tpu.memory_space<smem>>
    %54 = vector.broadcast %53 : f32 to vector<1x256xf32>
    %55 = arith.mulf %54, %4 : vector<1x256xf32>
    %56 = arith.addf %52, %55 : vector<1x256xf32>
    %c2_25 = arith.constant 2 : index
    %c3_26 = arith.constant 3 : index
    %57 = memref.load %arg2[%c2_25, %c3_26] : memref<8x5xf32, #tpu.memory_space<smem>>
    %58 = vector.broadcast %57 : f32 to vector<1x256xf32>
    %59 = arith.mulf %58, %5 : vector<1x256xf32>
    %60 = arith.addf %56, %59 : vector<1x256xf32>
    %c2_27 = arith.constant 2 : index
    %c4_28 = arith.constant 4 : index
    %61 = memref.load %arg2[%c2_27, %c4_28] : memref<8x5xf32, #tpu.memory_space<smem>>
    %62 = vector.broadcast %61 : f32 to vector<1x256xf32>
    %63 = arith.addf %60, %62 : vector<1x256xf32>
    %cst_29 = arith.constant 0.000000e+00 : f32
    %64 = vector.broadcast %cst_29 : f32 to vector<1x256xf32>
    %65 = arith.maximumf %63, %64 : vector<1x256xf32>
    %c3_30 = arith.constant 3 : index
    %c0_31 = arith.constant 0 : index
    %66 = memref.load %arg2[%c3_30, %c0_31] : memref<8x5xf32, #tpu.memory_space<smem>>
    %67 = vector.broadcast %66 : f32 to vector<1x256xf32>
    %68 = arith.mulf %67, %2 : vector<1x256xf32>
    %c3_32 = arith.constant 3 : index
    %c1_33 = arith.constant 1 : index
    %69 = memref.load %arg2[%c3_32, %c1_33] : memref<8x5xf32, #tpu.memory_space<smem>>
    %70 = vector.broadcast %69 : f32 to vector<1x256xf32>
    %71 = arith.mulf %70, %3 : vector<1x256xf32>
    %72 = arith.addf %68, %71 : vector<1x256xf32>
    %c3_34 = arith.constant 3 : index
    %c2_35 = arith.constant 2 : index
    %73 = memref.load %arg2[%c3_34, %c2_35] : memref<8x5xf32, #tpu.memory_space<smem>>
    %74 = vector.broadcast %73 : f32 to vector<1x256xf32>
    %75 = arith.mulf %74, %4 : vector<1x256xf32>
    %76 = arith.addf %72, %75 : vector<1x256xf32>
    %c3_36 = arith.constant 3 : index
    %c3_37 = arith.constant 3 : index
    %77 = memref.load %arg2[%c3_36, %c3_37] : memref<8x5xf32, #tpu.memory_space<smem>>
    %78 = vector.broadcast %77 : f32 to vector<1x256xf32>
    %79 = arith.mulf %78, %5 : vector<1x256xf32>
    %80 = arith.addf %76, %79 : vector<1x256xf32>
    %c3_38 = arith.constant 3 : index
    %c4_39 = arith.constant 4 : index
    %81 = memref.load %arg2[%c3_38, %c4_39] : memref<8x5xf32, #tpu.memory_space<smem>>
    %82 = vector.broadcast %81 : f32 to vector<1x256xf32>
    %83 = arith.addf %80, %82 : vector<1x256xf32>
    %cst_40 = arith.constant 0.000000e+00 : f32
    %84 = vector.broadcast %cst_40 : f32 to vector<1x256xf32>
    %85 = arith.maximumf %83, %84 : vector<1x256xf32>
    %c4_41 = arith.constant 4 : index
    %c0_42 = arith.constant 0 : index
    %86 = memref.load %arg2[%c4_41, %c0_42] : memref<8x5xf32, #tpu.memory_space<smem>>
    %87 = vector.broadcast %86 : f32 to vector<1x256xf32>
    %88 = arith.mulf %87, %25 : vector<1x256xf32>
    %c4_43 = arith.constant 4 : index
    %c1_44 = arith.constant 1 : index
    %89 = memref.load %arg2[%c4_43, %c1_44] : memref<8x5xf32, #tpu.memory_space<smem>>
    %90 = vector.broadcast %89 : f32 to vector<1x256xf32>
    %91 = arith.mulf %90, %45 : vector<1x256xf32>
    %92 = arith.addf %88, %91 : vector<1x256xf32>
    %c4_45 = arith.constant 4 : index
    %c2_46 = arith.constant 2 : index
    %93 = memref.load %arg2[%c4_45, %c2_46] : memref<8x5xf32, #tpu.memory_space<smem>>
    %94 = vector.broadcast %93 : f32 to vector<1x256xf32>
    %95 = arith.mulf %94, %65 : vector<1x256xf32>
    %96 = arith.addf %92, %95 : vector<1x256xf32>
    %c4_47 = arith.constant 4 : index
    %c3_48 = arith.constant 3 : index
    %97 = memref.load %arg2[%c4_47, %c3_48] : memref<8x5xf32, #tpu.memory_space<smem>>
    %98 = vector.broadcast %97 : f32 to vector<1x256xf32>
    %99 = arith.mulf %98, %85 : vector<1x256xf32>
    %100 = arith.addf %96, %99 : vector<1x256xf32>
    %c4_49 = arith.constant 4 : index
    %c4_50 = arith.constant 4 : index
    %101 = memref.load %arg2[%c4_49, %c4_50] : memref<8x5xf32, #tpu.memory_space<smem>>
    %102 = vector.broadcast %101 : f32 to vector<1x256xf32>
    %103 = arith.addf %100, %102 : vector<1x256xf32>
    %cst_51 = arith.constant 0.000000e+00 : f32
    %104 = vector.broadcast %cst_51 : f32 to vector<1x256xf32>
    %105 = arith.maximumf %103, %104 : vector<1x256xf32>
    %c5 = arith.constant 5 : index
    %c0_52 = arith.constant 0 : index
    %106 = memref.load %arg2[%c5, %c0_52] : memref<8x5xf32, #tpu.memory_space<smem>>
    %107 = vector.broadcast %106 : f32 to vector<1x256xf32>
    %108 = arith.mulf %107, %25 : vector<1x256xf32>
    %c5_53 = arith.constant 5 : index
    %c1_54 = arith.constant 1 : index
    %109 = memref.load %arg2[%c5_53, %c1_54] : memref<8x5xf32, #tpu.memory_space<smem>>
    %110 = vector.broadcast %109 : f32 to vector<1x256xf32>
    %111 = arith.mulf %110, %45 : vector<1x256xf32>
    %112 = arith.addf %108, %111 : vector<1x256xf32>
    %c5_55 = arith.constant 5 : index
    %c2_56 = arith.constant 2 : index
    %113 = memref.load %arg2[%c5_55, %c2_56] : memref<8x5xf32, #tpu.memory_space<smem>>
    %114 = vector.broadcast %113 : f32 to vector<1x256xf32>
    %115 = arith.mulf %114, %65 : vector<1x256xf32>
    %116 = arith.addf %112, %115 : vector<1x256xf32>
    %c5_57 = arith.constant 5 : index
    %c3_58 = arith.constant 3 : index
    %117 = memref.load %arg2[%c5_57, %c3_58] : memref<8x5xf32, #tpu.memory_space<smem>>
    %118 = vector.broadcast %117 : f32 to vector<1x256xf32>
    %119 = arith.mulf %118, %85 : vector<1x256xf32>
    %120 = arith.addf %116, %119 : vector<1x256xf32>
    %c5_59 = arith.constant 5 : index
    %c4_60 = arith.constant 4 : index
    %121 = memref.load %arg2[%c5_59, %c4_60] : memref<8x5xf32, #tpu.memory_space<smem>>
    %122 = vector.broadcast %121 : f32 to vector<1x256xf32>
    %123 = arith.addf %120, %122 : vector<1x256xf32>
    %cst_61 = arith.constant 0.000000e+00 : f32
    %124 = vector.broadcast %cst_61 : f32 to vector<1x256xf32>
    %125 = arith.maximumf %123, %124 : vector<1x256xf32>
    %c6 = arith.constant 6 : index
    %c0_62 = arith.constant 0 : index
    %126 = memref.load %arg2[%c6, %c0_62] : memref<8x5xf32, #tpu.memory_space<smem>>
    %127 = vector.broadcast %126 : f32 to vector<1x256xf32>
    %128 = arith.mulf %127, %25 : vector<1x256xf32>
    %c6_63 = arith.constant 6 : index
    %c1_64 = arith.constant 1 : index
    %129 = memref.load %arg2[%c6_63, %c1_64] : memref<8x5xf32, #tpu.memory_space<smem>>
    %130 = vector.broadcast %129 : f32 to vector<1x256xf32>
    %131 = arith.mulf %130, %45 : vector<1x256xf32>
    %132 = arith.addf %128, %131 : vector<1x256xf32>
    %c6_65 = arith.constant 6 : index
    %c2_66 = arith.constant 2 : index
    %133 = memref.load %arg2[%c6_65, %c2_66] : memref<8x5xf32, #tpu.memory_space<smem>>
    %134 = vector.broadcast %133 : f32 to vector<1x256xf32>
    %135 = arith.mulf %134, %65 : vector<1x256xf32>
    %136 = arith.addf %132, %135 : vector<1x256xf32>
    %c6_67 = arith.constant 6 : index
    %c3_68 = arith.constant 3 : index
    %137 = memref.load %arg2[%c6_67, %c3_68] : memref<8x5xf32, #tpu.memory_space<smem>>
    %138 = vector.broadcast %137 : f32 to vector<1x256xf32>
    %139 = arith.mulf %138, %85 : vector<1x256xf32>
    %140 = arith.addf %136, %139 : vector<1x256xf32>
    %c6_69 = arith.constant 6 : index
    %c4_70 = arith.constant 4 : index
    %141 = memref.load %arg2[%c6_69, %c4_70] : memref<8x5xf32, #tpu.memory_space<smem>>
    %142 = vector.broadcast %141 : f32 to vector<1x256xf32>
    %143 = arith.addf %140, %142 : vector<1x256xf32>
    %cst_71 = arith.constant 0.000000e+00 : f32
    %144 = vector.broadcast %cst_71 : f32 to vector<1x256xf32>
    %145 = arith.maximumf %143, %144 : vector<1x256xf32>
    %c7 = arith.constant 7 : index
    %c0_72 = arith.constant 0 : index
    %146 = memref.load %arg2[%c7, %c0_72] : memref<8x5xf32, #tpu.memory_space<smem>>
    %147 = vector.broadcast %146 : f32 to vector<1x256xf32>
    %148 = arith.mulf %147, %25 : vector<1x256xf32>
    %c7_73 = arith.constant 7 : index
    %c1_74 = arith.constant 1 : index
    %149 = memref.load %arg2[%c7_73, %c1_74] : memref<8x5xf32, #tpu.memory_space<smem>>
    %150 = vector.broadcast %149 : f32 to vector<1x256xf32>
    %151 = arith.mulf %150, %45 : vector<1x256xf32>
    %152 = arith.addf %148, %151 : vector<1x256xf32>
    %c7_75 = arith.constant 7 : index
    %c2_76 = arith.constant 2 : index
    %153 = memref.load %arg2[%c7_75, %c2_76] : memref<8x5xf32, #tpu.memory_space<smem>>
    %154 = vector.broadcast %153 : f32 to vector<1x256xf32>
    %155 = arith.mulf %154, %65 : vector<1x256xf32>
    %156 = arith.addf %152, %155 : vector<1x256xf32>
    %c7_77 = arith.constant 7 : index
    %c3_78 = arith.constant 3 : index
    %157 = memref.load %arg2[%c7_77, %c3_78] : memref<8x5xf32, #tpu.memory_space<smem>>
    %158 = vector.broadcast %157 : f32 to vector<1x256xf32>
    %159 = arith.mulf %158, %85 : vector<1x256xf32>
    %160 = arith.addf %156, %159 : vector<1x256xf32>
    %c7_79 = arith.constant 7 : index
    %c4_80 = arith.constant 4 : index
    %161 = memref.load %arg2[%c7_79, %c4_80] : memref<8x5xf32, #tpu.memory_space<smem>>
    %162 = vector.broadcast %161 : f32 to vector<1x256xf32>
    %163 = arith.addf %160, %162 : vector<1x256xf32>
    %cst_81 = arith.constant 0.000000e+00 : f32
    %164 = vector.broadcast %cst_81 : f32 to vector<1x256xf32>
    %165 = arith.maximumf %163, %164 : vector<1x256xf32>
    %166 = arith.addf %105, %2 : vector<1x256xf32>
    %167 = arith.addf %125, %3 : vector<1x256xf32>
    %168 = arith.addf %145, %4 : vector<1x256xf32>
    %169 = arith.addf %165, %5 : vector<1x256xf32>
    %170 = tpu.concatenate %166, %167, %168, %169 in 0 : vector<1x256xf32>, vector<1x256xf32>, vector<1x256xf32>, vector<1x256xf32> -> vector<4x256xf32>
    %c0_82 = arith.constant 0 : index
    %c0_83 = arith.constant 0 : index
    %c0_84 = arith.constant 0 : index
    %171 = vector.load %arg4[%c0_82, %c0_83, %c0_84] : memref<1x4x256xf32, #tpu.memory_space<vmem>>, vector<1x4x256xf32>
    %172 = vector.shape_cast %171 : vector<1x4x256xf32> to vector<4x256xf32>
    %173 = vector.shape_cast %170 : vector<4x256xf32> to vector<1x4x256xf32>
    tpu.vector_store %arg4[%c0_82, %c0_83, %c0_84], %173 {strides = array<i32>} : memref<1x4x256xf32, #tpu.memory_space<vmem>>, vector<1x4x256xf32>,
    return
  }
  func.func @transform_0(%arg0: i32, %arg1: i32) -> (i32, i32) {
    %c0_i32 = arith.constant 0 : i32
    %c0_i32_0 = arith.constant 0 : i32
    %c0_i32_1 = arith.constant 0 : i32
    return %c0_i32, %c0_i32_0 : i32, i32
  }
  func.func @transform_1(%arg0: i32, %arg1: i32) -> (i32, i32, i32) {
    %c0_i32 = arith.constant 0 : i32
    %c0_i32_0 = arith.constant 0 : i32
    return %arg0, %c0_i32, %arg1 : i32, i32, i32
  }
  func.func @transform_2(%arg0: i32, %arg1: i32) -> (i32, i32, i32) {
    %c0_i32 = arith.constant 0 : i32
    %c0_i32_0 = arith.constant 0 : i32
    return %arg0, %c0_i32, %arg1 : i32, i32, i32
  }
}

</mosaic_0001>

<bundles_post_ra>
// kernel: tpu_custom_call.1
= control target key start
LH: loop header
LB: loop body
LE: loop exit
PB: predicated region body
PF: predicated region fallthrough
CT: control target
= control target key end

     0   :  { %7 = vsyncpa [#allocation5], 0  ;;  %s1231_s0 = inlined_call_operand.hbm [shape: f32[8,5], index: 0, kind: input, shape index: {}]   ;;  %s1232_s1 = inlined_call_operand.hbm [shape: f32[2,4,256], index: 1, kind: input, shape index: {}]   ;;  %s1233_s2 = inlined_call_operand.hbm [shape: f32[2,4,256], index: 2, kind: output, shape index: {}]  }
   0x1   :  { %8 = vsyncpa [#allocation3], 0 }
   0x2   :  { %10 = vsyncpa [#allocation3 + $0x1], 0 }
   0x3   :  { %11 = vsyncpa [#allocation4], 0 }
   0x4   :  { %13 = vsyncpa [#allocation4 + $0x1], 0  ;;  %s873_s9 = smov 0   ;;  %s875_s10 = smov 0  }
   0x5   :  { %s877_s11 = smov 0   ;;  %s879_s12 = smov 0  }
   0x6   :  { %s881_s13 = smov 0   ;;  %s883_s14 = smov 0  }
   0x7 LB: > { %s578_s15 = sadd.s32 4294967295, %s853_s14   ;;  %s579_s16 = sadd.s32 4294967294, %s853_s14   ;;  %s853_s14 = sphi %s883_s14, %s19_s14   ;;  %s849_s13 = sphi %s881_s13, %s1259_s13   ;;  %s845_s12 = sphi %s879_s12, %s1258_s12   ;;  %s841_s11 = sphi %s877_s11, %s1257_s11   ;;  %s837_s10 = sphi %s875_s10, %s1256_s10   ;;  %s833_s9 = sphi %s873_s9, %s1255_s9  }
   0x8   : > { %p74_p0 = scmp.ne.s32.totalorder %s837_s10, %s833_s9  ;;  %p907_p1 = scmp.eq.s32.totalorder %s578_s15, 0 }
   0x9   : > { %p911_p2 = scmp.eq.s32.totalorder %s578_s15, 1  ;;  %p106_p3 = scmp.eq.s32.totalorder %s579_s16, 1 }
   0xa   : > { %s1239_s17 = scalar_select %p907_p1, 1, 0 }
   0xb   : > { %p917_p4 = por %p907_p1, %p74_p0  ;;  %p580_p5 = scmp.ge.s32.totalorder %s853_s14, 1 }
   0xc   : > { %p922_p6 = por %p106_p3, %p74_p0  ;;  %p113_p7 = scmp.lt.s32.totalorder %s853_s14, 3 }
   0xd   : > { %s1241_s19 = scalar_select %p917_p4, 1, 0 }
   0xe   : > { %s1242_s20 = scalar_select %p922_p6, 1, 0 }
   0xf   : > { %p927_p8 = pnand %p580_p5, %p113_p7  ;;  %s31_s22 = sadd.s32 1, %s849_s13 }
  0x10   : > { %p941_p12 = scmp.ge.s32.totalorder %s31_s22, 2  ;;  %s61_s25 = sadd.s32 1, %s841_s11 }
  0x11   : > { %p659_p10 = pneg %p927_p8  ;;  %p68_p13 = scmp.ne.s32.totalorder %s841_s11, %s837_s10 }
  0x12   : > { %p69_p0 = scmp.eq.s32.totalorder %s853_s14, 0  ;;  %s724_s28 = scalar_lea.hbm %s1231_s0, 128 }
  0x13   : > { %p937_p11 = pnand %p659_p10, %p907_p1  ;;  %p725_p3 = scmp.ne.s32.totalorder %s1231_s0, %s724_s28 }
  0x14   : > { %p731_p9 = scmp.lt.u32.totalorder %s724_s28, %s1231_s0 }
  0x15   : > { %p726_p5 = pneg %p937_p11 }
  0x17   : > { %p727_p7 = pnand %p726_p5, %p725_p3 }
  0x19   : > { %p728_p10 = pneg %p727_p7 }
  0x1b   : > { %p733_p6 = pnand %p731_p9, %p728_p10 }
  0x1d   : > { %736 = shalt.err (!%p733_p6)
}
  0x1e   : > { %s855_s5 = smov [#allocation2]   ;;  %s1261_s22 = smov (%p941_p12, %s31_s22), 0 }
  0x1f   : > { %662 = dma.hbm_to_smem (!%p937_p11), %s1231_s0, 128, %s855_s5, [#allocation5]  }
  0x20   : > { %p972_p6 = por %p69_p0, %p68_p13  ;;  %p981_p9 = por %p911_p2, %p68_p13 }
  0x21   : > { %s56_s16 = ssub.s32 %s849_s13, %s1261_s22  ;;  %p672_p3 = scmp.lt.s32.totalorder %s853_s14, 2 }
  0x22   : > { %s1247_s15 = scalar_select %p981_p9, 1, 0 }
  0x23   : > { %p59_p5 = scmp.eq.s32.totalorder %s56_s16, 0  ;;  %s135_s23 = sand.u32 1, %s841_s11  }
  0x24   : > { %s583_s24 = sshll.u32 %s135_s23, 3  ;;  %s649_s27 = sshll.u32 %s849_s13, 7 }
  0x25   : > { %s990_s26 = scalar_select %p59_p5, %s841_s11, %s61_s25  }
  0x26   : > { %s996_s30 = scalar_lea.hbm %s1232_s1, %s649_s27  ;;  %s139_s18 = scalar_lea.vmem [#allocation6], %s583_s24 }
  0x27   : > { %s149_s3 = sshll.u32 %s139_s18, 4  ;;  %p1002_p2 = pnand %p672_p3, %p972_p6  ;;  %s998_s3 = int_to_ptr.vmem [resolvable:$true] %s149_s3 }
  0x28   : > { %s136_s25 = scalar_lea.sflag [#allocation3], %s135_s23  ;;  %s737_s5 = scalar_lea.hbm %s996_s30, 128 }
  0x29   : > { %p738_p11 = scmp.ne.s32.totalorder %s996_s30, %s737_s5  ;;  %p739_p12 = pneg %p1002_p2 }
  0x2a   : > { %s742_s16 = scalar_lea.hbm %s1232_s1, 256  ;;  %p743_p7 = scmp.lt.u32.totalorder %s996_s30, %s1232_s1 }
  0x2b   : > { %p740_p13 = pnand %p739_p12, %p738_p11  ;;  %p744_p10 = scmp.lt.u32.totalorder %s742_s16, %s737_s5 }
  0x2c   : > { %p746_p3 = scmp.lt.u32.totalorder %s737_s5, %s996_s30 }
  0x2d   : > { %p741_p0 = pneg %p740_p13  ;;  %p745_p6 = por %p744_p10, %p743_p7 }
  0x2f   : > { %p747_p5 = por %p746_p3, %p745_p6 }
  0x31   : > { %p748_p9 = pnand %p747_p5, %p741_p0 }
  0x33   : > { %751 = shalt.err (!%p748_p9)
}
  0x34   : > { %s752_s23 = scalar_lea.vmem %s998_s3, 128  ;;  %s856_s27 = smov [#allocation6]  }
  0x35   : > { %p753_p11 = scmp.ne.s32.totalorder %s998_s3, %s752_s23  ;;  %s757_s28 = sshll.u32 %s856_s27, 4  ;;  %s758_s28 = int_to_ptr.vmem [resolvable:$false] %s757_s28 }
  0x36   : > { %s759_s29 = scalar_lea.vmem %s758_s28, 256  ;;  %p760_p1 = scmp.lt.s32.totalorder %s998_s3, %s758_s28 }
  0x37   : > { %p755_p13 = pnand %p753_p11, %p739_p12  ;;  %p761_p7 = scmp.lt.s32.totalorder %s759_s29, %s752_s23 }
  0x39   : > { %p756_p4 = pneg %p755_p13  ;;  %p762_p10 = por %p761_p7, %p760_p1 }
  0x3b   : > { %p763_p6 = pnand %p762_p10, %p756_p4 }
  0x3d   : > { %766 = shalt.err (!%p763_p6)
}
  0x3e   : > { %666 = dma.hbm_to_vmem [thread:$0]  (!%p1002_p2), %s996_s30, 128, %s998_s3, %s136_s25  }
  0x3f   : > { %158 = sbr.rel (%p927_p8) target bundleno = 141 (0x8d), region = 28  ;;  %p1249_p9 = scmp.ne.s32.totalorder (!%p927_p8), %s1239_s17, 0 }
  0x46   : > { %820 = dma.done.wait (%p1249_p9), [#allocation5], 128  }
  0x47   : > { %822 = vsyncadd (%p1249_p9), [#allocation5], 4294967168  ;;  %s1038_s18 = sand.u32 1, %s837_s10   ;;  %p1250_p1 = scmp.ne.s32.totalorder %s1241_s19, 0 }
  0x48   : > { %s1238_s4 = sshll.u32 %s1038_s18, 3  ;;  %s165_s5 = scalar_lea.sflag [#allocation3], %s1038_s18 }
  0x49   : > { %s168_s30 = scalar_lea.vmem [#allocation6], %s1238_s4 }
  0x4a   : > { %824 = dma.done.wait (%p1250_p1), %s165_s5, 128  }
  0x4b   : > { %826 = vsyncadd (%p1250_p1), %s165_s5, 4294967168 }
  0x4c   : > { %173 = sfence }
  0x4d   : > { %s193_s21 = sld [smem:[#allocation2]]  ;;  %s590_s17 = sld [smem:[#allocation2 + $0x1]]  ;;  %v1054_v0 = vld [vmem:[%s168_s30] sm:$0xff]  ;;  %v408_v1 = vlaneseq  ;;  %vm451_vm0 = vcmask 1040384   ;;  %vm454_vm1 = vcmask 1041408   ;;  %vm457_vm2 = vcmask 1042432  }
  0x4e   : > { %s592_s3 = sld [smem:[#allocation2 + $0x2]]  ;;  %s594_s25 = sld [smem:[#allocation2 + $0x3]] }
  0x4f   : > { %s1048_s6 = sld [smem:[#allocation2 + $0x4]]  ;;  %s597_s7 = sld [smem:[#allocation2 + $0x80]]  ;;  %v1072_v12 = vshrl.u32 %v408_v1, 7 }
  0x50   : > { %s598_s16 = sld [smem:[#allocation2 + $0x81]]  ;;  %s1050_s8 = sld [smem:[#allocation2 + $0x82]] }
  0x51   : > { %s1052_s24 = sld [smem:[#allocation2 + $0x83]]  ;;  %s1056_s23 = sld [smem:[#allocation2 + $0x100]] }
  0x52   : > { %s1058_s19 = sld [smem:[#allocation2 + $0x101]]  ;;  %s1060_s27 = sld [smem:[#allocation2 + $0x102]] }
  0x53   : > { %v194_v2 = vstv %s193_s21  ;;  %v197_v3 = vstv %s590_s17  ;;  %s1062_s28 = sld [smem:[#allocation2 + $0x103]]  ;;  %s1067_s29 = sld [smem:[#allocation2 + $0x84]] }
  0x54   : > { %v205_v4 = vstv %s592_s3  ;;  %v195_v5 = vmul.f32 %v194_v2, %v1054_v0  ;;  %v198_v6 = vmul.f32 %v197_v3, %v1054_v0  ;;  %v213_v8 = vstv %s594_s25  ;;  %s1069_s5 = sld [smem:[#allocation2 + $0x180]]  ;;  %s1076_s30 = sld [smem:[#allocation2 + $0x181]] }
  0x55   : > { %v206_v7 = vmul.f32 %v205_v4, %v1054_v0  ;;  %v214_v9 = vmul.f32 %v213_v8, %v1054_v0  ;;  %v225_v10 = vstv %s597_s7  ;;  %s1078_s21 = sld [smem:[#allocation2 + $0x182]]  ;;  %v221_v18 = vstv %s1048_s6  ;;  %s1083_s17 = sld [smem:[#allocation2 + $0x183]] }
  0x56   : > { %v228_v11 = vstv %s598_s16  ;;  %v591_v13 = vrot.slane %v198_v6, 9  ;;  %v226_v15 = vmul.f32 %v225_v10, %v1054_v0  ;;  %v236_v19 = vstv %s1050_s8  ;;  %s1087_s3 = sld [smem:[#allocation2 + $0x104]]  ;;  %s1093_s25 = sld [smem:[#allocation2 + $0x200]] }
  0x57   : > { %v593_v14 = vrot.slane %v206_v7, 10  ;;  %v229_v16 = vmul.f32 %v228_v11, %v1054_v0  ;;  %v595_v17 = vrot.slane %v214_v9, 11  ;;  %v244_v20 = vstv %s1052_s24  ;;  %s1095_s6 = sld [smem:[#allocation2 + $0x184]]  ;;  %s1097_s7 = sld [smem:[#allocation2 + $0x201]] }
  0x58   : > { %v203_v21 = vadd.f32 %v591_v13, %v195_v5  ;;  %v237_v23 = vmul.f32 %v236_v19, %v1054_v0  ;;  %v245_v24 = vmul.f32 %v244_v20, %v1054_v0  ;;  %v256_v25 = vstv %s1056_s23  ;;  %s1103_s16 = sld [smem:[#allocation2 + $0x202]]  ;;  %s1105_s8 = sld [smem:[#allocation2 + $0x203]] }
  0x59   : > { %v599_v22 = vrot.slane %v229_v16, 9  ;;  %v259_v26 = vstv %s1058_s19  ;;  %v267_v27 = vstv %s1060_s27  ;;  %v275_v28 = vstv %s1062_s28  ;;  %s1109_s24 = sld [smem:[#allocation2 + $0x280]]  ;;  %s1111_s23 = sld [smem:[#allocation2 + $0x281]] }
  0x5a   : > { %v211_v29 = vadd.f32 %v593_v14, %v203_v21  ;;  %v601_v31 = vrot.slane %v237_v23, 10  ;;  %v603_v32 = vrot.slane %v245_v24, 11  ;;  %v257_v33 = vmul.f32 %v256_v25, %v1054_v0  ;;  %s1114_s19 = sld [smem:[#allocation2 + $0x204]]  ;;  %s1118_s27 = sld [smem:[#allocation2 + $0x282]] }
  0x5b   : > { %v234_v30 = vadd.f32 %v599_v22, %v226_v15  ;;  %v260_v34 = vmul.f32 %v259_v26, %v1054_v0  ;;  %v268_v35 = vmul.f32 %v267_v27, %v1054_v0  ;;  %v276_v36 = vmul.f32 %v275_v28, %v1054_v0  ;;  %s1120_s28 = sld [smem:[#allocation2 + $0x283]]  ;;  %s1142_s4 = sld [smem:[#allocation2 + $0x381]] }
  0x5c   : > { %v219_v37 = vadd.f32 %v595_v17, %v211_v29  ;;  %v252_v39 = vstv %s1067_s29  ;;  %v287_v40 = vstv %s1069_s5  ;;  %v290_v47 = vstv %s1076_s30  ;;  %s1125_s29 = sld [smem:[#allocation2 + $0x284]]  ;;  %s1127_s5 = sld [smem:[#allocation2 + $0x300]] }
  0x5d   : > { %v242_v38 = vadd.f32 %v601_v31, %v234_v30  ;;  %v607_v41 = vrot.slane %v260_v34, 9  ;;  %v609_v42 = vrot.slane %v268_v35, 10  ;;  %v611_v43 = vrot.slane %v276_v36, 11  ;;  %s1131_s30 = sld [smem:[#allocation2 + $0x301]]  ;;  %p1252_p8 = scmp.ne.s32.totalorder %s1247_s15, 0 }
  0x5e   : > { %v288_v44 = vmul.f32 %v287_v40, %v1054_v0  ;;  %v222_v45 = vadd.f32 %v221_v18, %v219_v37  ;;  %v298_v48 = vstv %s1078_s21  ;;  %v291_v50 = vmul.f32 %v290_v47, %v1054_v0  ;;  %s1133_s21 = sld [smem:[#allocation2 + $0x302]] }
  0x5f   : > { %v250_v46 = vadd.f32 %v603_v32, %v242_v38  ;;  %v265_v49 = vadd.f32 %v607_v41, %v257_v33  ;;  %v299_v51 = vmul.f32 %v298_v48, %v1054_v0  ;;  %v306_v52 = vstv %s1083_s17  ;;  %s1136_s17 = sld [smem:[#allocation2 + $0x303]] }
  0x60   : > { %v223_v53 = vmax.f32 %v222_v45, 0.0  ;;  %v283_v55 = vstv %s1087_s3  ;;  %v307_v56 = vmul.f32 %v306_v52, %v1054_v0  ;;  %v615_v58 = vrot.slane %v291_v50, 9  ;;  %s1140_s3 = sld [smem:[#allocation2 + $0x380]] }
  0x61   : > { %v253_v54 = vadd.f32 %v252_v39, %v250_v46  ;;  %v273_v57 = vadd.f32 %v609_v42, %v265_v49  ;;  %v617_v59 = vrot.slane %v299_v51, 10  ;;  %v318_v60 = vstv %s1093_s25  ;;  %s1148_s25 = sld [smem:[#allocation2 + $0x382]] }
  0x62   : > { %v314_v62 = vstv %s1095_s6  ;;  %v319_v63 = vmul.f32 %v318_v60, %v223_v53  ;;  %v321_v1 = vstv %s1097_s7  ;;  %v296_v3 = vadd.f32 %v615_v58, %v288_v44  ;;  %s1150_s6 = sld [smem:[#allocation2 + $0x383]]  ;;  %s1155_s7 = sld [smem:[#allocation2 + $0x304]] }
  0x63   : > { %v254_v61 = vmax.f32 %v253_v54, 0.0  ;;  %v281_v2 = vadd.f32 %v611_v43, %v273_v57  ;;  %v619_v4 = vrot.slane %v307_v56, 11  ;;  %v325_v5 = vstv %s1103_s16  ;;  %s1161_s16 = sld [smem:[#allocation2 + $0x384]] }
  0x64   : > { %v329_v7 = vstv %s1105_s8  ;;  %v337_v8 = vstv %s1109_s24  ;;  %v340_v9 = vstv %s1111_s23  ;;  %v304_v11 = vadd.f32 %v617_v59, %v296_v3  ;;  %s1251_s8 = sshll.u32 %s1038_s18, 3 }
  0x65   : > { %v322_v6 = vmul.f32 %v321_v1, %v254_v61  ;;  %v284_v10 = vadd.f32 %v283_v55, %v281_v2  ;;  %v338_v13 = vmul.f32 %v337_v8, %v223_v53  ;;  %v341_v14 = vmul.f32 %v340_v9, %v254_v61  ;;  %s189_s24 = scalar_lea.vmem [#allocation7], %s1251_s8 }
  0x66   : > { %v333_v16 = vstv %s1114_s19  ;;  %v344_v17 = vstv %s1118_s27  ;;  %v348_v18 = vstv %s1120_s28  ;;  %v312_v20 = vadd.f32 %v619_v4, %v304_v11  ;;  %s482_s23 = sshll.u32 %s189_s24, 4  ;;  %s1184_s23 = int_to_ptr.vmem [resolvable:$true] %s482_s23 }
  0x67   : > { %v323_v15 = vadd.f32 %v322_v6, %v319_v63  ;;  %v285_v19 = vmax.f32 %v284_v10, 0.0  ;;  %v342_v21 = vadd.f32 %v341_v14, %v338_v13  ;;  %v356_v22 = vstv %s1127_s5  ;;  %s767_s5 = scalar_lea.vmem %s1184_s23, 128 }
  0x68   : > { %v352_v23 = vstv %s1125_s29  ;;  %v357_v24 = vmul.f32 %v356_v22, %v223_v53  ;;  %v359_v25 = vstv %s1131_s30  ;;  %v363_v26 = vstv %s1133_s21  ;;  %s466_s29 = scalar_lea.sflag [#allocation4], %s1038_s18  ;;  %p768_p4 = scmp.ne.s32.totalorder %s1184_s23, %s767_s5 }
  0x69   : > { %v315_v27 = vadd.f32 %v314_v62, %v312_v20  ;;  %v326_v28 = vmul.f32 %v325_v5, %v285_v19  ;;  %v345_v29 = vmul.f32 %v344_v17, %v285_v19  ;;  %v360_v30 = vmul.f32 %v359_v25, %v254_v61 }
  0x6a   : > { %v364_v31 = vmul.f32 %v363_v26, %v285_v19  ;;  %v367_v32 = vstv %s1136_s17  ;;  %v375_v33 = vstv %s1140_s3  ;;  %v378_v34 = vstv %s1142_s4  ;;  %s650_s4 = sshll.u32 %s845_s12, 7  ;;  %p769_p2 = pnand %p768_p4, %p1252_p8 }
  0x6b   : > { %v316_v35 = vmax.f32 %v315_v27, 0.0  ;;  %v327_v36 = vadd.f32 %v326_v28, %v323_v15  ;;  %v346_v37 = vadd.f32 %v345_v29, %v342_v21  ;;  %v361_v38 = vadd.f32 %v360_v30, %v357_v24  ;;  %s1182_s28 = scalar_lea.hbm %s1233_s2, %s650_s4  ;;  %s857_s12 = smov [#allocation7]  }
  0x6c   : > { %v376_v39 = vmul.f32 %v375_v33, %v223_v53  ;;  %v379_v40 = vmul.f32 %v378_v34, %v254_v61  ;;  %v382_v41 = vstv %s1148_s25  ;;  %v386_v42 = vstv %s1150_s6  ;;  %p770_p12 = pneg %p769_p2  ;;  %s771_s30 = sshll.u32 %s857_s12, 4  ;;  %s772_s30 = int_to_ptr.vmem [resolvable:$false] %s771_s30 }
  0x6d   : > { %v330_v43 = vmul.f32 %v329_v7, %v316_v35  ;;  %v349_v44 = vmul.f32 %v348_v18, %v316_v35  ;;  %v365_v45 = vadd.f32 %v364_v31, %v361_v38  ;;  %v368_v46 = vmul.f32 %v367_v32, %v316_v35  ;;  %s773_s21 = scalar_lea.vmem %s772_s30, 256  ;;  %p774_p0 = scmp.lt.s32.totalorder %s1184_s23, %s772_s30 }
  0x6e   : > { %v371_v47 = vstv %s1155_s7  ;;  %v380_v48 = vadd.f32 %v379_v40, %v376_v39  ;;  %v383_v49 = vmul.f32 %v382_v41, %v285_v19  ;;  %v387_v50 = vmul.f32 %v386_v42, %v316_v35  ;;  %p775_p3 = scmp.lt.s32.totalorder %s773_s21, %s767_s5 }
  0x6f   : > { %v331_v51 = vadd.f32 %v330_v43, %v327_v36  ;;  %v350_v52 = vadd.f32 %v349_v44, %v346_v37  ;;  %v369_v54 = vadd.f32 %v368_v46, %v365_v45  ;;  %v641_v56 = vrot.slane %v1054_v0, 9 }
  0x70   : > { %v384_v55 = vadd.f32 %v383_v49, %v380_v48  ;;  %v642_v53 = vrot.slane %v1054_v0, 10  ;;  %v390_v60 = vstv %s1161_s16  ;;  %v410_v62 = vsub.s32 0, %v1072_v12  ;;  %p776_p5 = por %p775_p3, %p774_p0 }
  0x71   : > { %v334_v57 = vadd.f32 %v333_v16, %v331_v51  ;;  %v353_v58 = vadd.f32 %v352_v23, %v350_v52  ;;  %v372_v59 = vadd.f32 %v371_v47, %v369_v54  ;;  %v414_v3 = vsub.s32 4, %v1072_v12 }
  0x72   : > { %v388_v61 = vadd.f32 %v387_v50, %v384_v55  ;;  %v643_v5 = vrot.slane %v1054_v0, 11  ;;  %p777_p11 = pnand %p776_p5, %p770_p12 }
  0x73   : > { %v335_v63 = vmax.f32 %v334_v57, 0.0  ;;  %v354_v1 = vmax.f32 %v353_v58, 0.0  ;;  %v373_v2 = vmax.f32 %v372_v59, 0.0 }
  0x74   : > { %v391_v4 = vadd.f32 %v390_v60, %v388_v61 }
  0x75   : > { %v393_v6 = vadd.f32 %v335_v63, %v1054_v0  ;;  %v398_v7 = vadd.f32 %v641_v56, %v354_v1  ;;  %v402_v8 = vadd.f32 %v642_v53, %v373_v2 }
  0x76   : > { %v392_v9 = vmax.f32 %v391_v4, 0.0 }
  0x77   : > { %v411_v10 = vrot.slane %v393_v6, %v410_v62  ;;  %v415_v11 = vrot.slane %v393_v6, %v414_v3  ;;  %v422_v13 = vrot.slane %v398_v7, %v410_v62  ;;  %v426_v14 = vrot.slane %v398_v7, %v414_v3 }
  0x78   : > { %v406_v15 = vadd.f32 %v643_v5, %v392_v9  ;;  %v433_v16 = vrot.slane %v402_v8, %v410_v62  ;;  %v437_v17 = vrot.slane %v402_v8, %v414_v3 }
  0x79   : > { %v452_v12 = vsel %vm451_vm0, %v411_v10, %v422_v13  ;;  %v453_v18 = vsel %vm451_vm0, %v415_v11, %v426_v14 }
  0x7a   : > { %v444_v19 = vrot.slane %v406_v15, %v410_v62  ;;  %v448_v0 = vrot.slane %v406_v15, %v414_v3  ;;  %v455_v20 = vsel %vm454_vm1, %v452_v12, %v433_v16  ;;  %v456_v21 = vsel %vm454_vm1, %v453_v18, %v437_v17 }
  0x7c   : > { %v458_v22 = vsel %vm457_vm2, %v455_v20, %v444_v19  ;;  %v459_v23 = vsel %vm457_vm2, %v456_v21, %v448_v0 }
  0x7d   : > { %v462_v24 = vcombine.low %v458_v22, %v459_v23 }
  0x7f   : > { %464 = vst [vmem:[%s189_s24] sm:$0xff] %v462_v24 }
  0x80   : > { %780 = shalt.err (!%p777_p11)
}
  0x81   : > { %s781_s18 = scalar_lea.hbm %s1182_s28, 128  ;;  %s785_s25 = scalar_lea.hbm %s1233_s2, 256 }
  0x82   : > { %p782_p13 = scmp.ne.s32.totalorder %s1182_s28, %s781_s18  ;;  %p786_p6 = scmp.lt.u32.totalorder %s1182_s28, %s1233_s2 }
  0x83   : > { %p787_p9 = scmp.lt.u32.totalorder %s785_s25, %s781_s18  ;;  %p789_p4 = scmp.lt.u32.totalorder %s781_s18, %s1182_s28 }
  0x84   : > { %p783_p7 = pnand %p782_p13, %p1252_p8 }
  0x85   : > { %p788_p1 = por %p787_p9, %p786_p6 }
  0x86   : > { %p784_p10 = pneg %p783_p7 }
  0x87   : > { %p790_p2 = por %p789_p4, %p788_p1 }
  0x89   : > { %p791_p12 = pnand %p790_p2, %p784_p10 }
  0x8b   : > { %794 = shalt.err (!%p791_p12)
}
  0x8c   : > { %657 = dma.vmem_to_hbm [thread:$0]  (%p1252_p8), %s1184_s23, 128, %s1182_s28, %s466_s29  }
  0x8d PF: > { %s494_s16 = sand.u32 1, %s833_s9   ;;  %p1253_p0 = scmp.ne.s32.totalorder %s1242_s20, 0 }
  0x8e   : > { %p1254_p3 = scmp.ge.s32.totalorder %s853_s14, 2  ;;  %s495_s4 = scalar_lea.sflag [#allocation4], %s494_s16 }
  0x90   : > { %p668_p5 = pnand %p1254_p3, %p1253_p0 }
  0x92   : > { %828 = dma.done.wait (!%p668_p5), %s495_s4, 128  }
  0x93   : > { %830 = vsyncadd (!%p668_p5), %s495_s4, 4294967168  ;;  %s19_s14 = sadd.s32 1, %s853_s14   ;;  %s1255_s9 = smov %s837_s10 }
  0x94   : > { %p16_p11 = scmp.ge.s32.totalorder %s19_s14, 4   ;;  %s1256_s10 = smov %s841_s11 }
  0x95   : > { %s1257_s11 = smov %s990_s26  ;;  %s1258_s12 = smov %s849_s13 }
  0x96   : > { %s1259_s13 = smov %s1261_s22  ;;  %18 = sbr.rel (!%p16_p11) target bundleno = 7 (0x7), region = 78 }
  0x9d   :  { %500 = vsyncpa [#allocation3], 1 }
  0x9e   :  { %502 = vsyncpa [#allocation3 + $0x1], 1 }
  0x9f   :  { %503 = vsyncpa [#allocation4], 1 }
  0xa0   :  { %505 = vsyncpa [#allocation4 + $0x1], 1 }
  0xa1   :  { %506 = vsyncpa [#allocation5], 1 }
  0xa2   :  { %508 = vsyncpa [#allocation5 + $0x1], 1 }

</bundles_post_ra>
